<compile_context>
chip_gen: v6e
topology: v6e:2x2x1
jax: 0.10.0
libtpu: 0.0.40
codegen_flags: <defaults>
</compile_context>

<pallas_src>
import functools

import jax
import jax.numpy as jnp
from jax import lax
from jax.experimental import pallas as pl
from jax.experimental.pallas import tpu as pltpu


def _attn_scores_kernel(x_ref, u_ref, o_ref, *, seq_len, tile_rows):
    i = pl.program_id(0)
    n = pl.num_programs(0)

    x = x_ref[...]                       # (tm, 2H), native dtype, streamed tile
    u = u_ref[...]                       # (1, 2H),  same dtype, resident

    # Lane-dense per-tile scores: contract the feature axis of both operands
    # directly -> (1, tm), accumulated in f32.
    scores = lax.dot_general(
        u, x,
        dimension_numbers=(((1,), (1,)), ((), ())),
        preferred_element_type=jnp.float32,
    )                                    # (1, tm) f32

    # Mask positions past the true sequence length (ragged last tile; the
    # overhanging rows of x hold unspecified data) with -inf -> exp() == 0.
    idx = lax.broadcasted_iota(jnp.int32, (1, tile_rows), 1) + i * tile_rows
    scores = jnp.where(idx < seq_len, scores, -jnp.inf)

    # Write row i of the resident (n_tiles, tm) score slab (dense layout,
    # 4 B/score; row width tm is a 128-lane multiple when tiling).
    o_ref[pl.ds(i, 1), :] = scores

    @pl.when(i == n - 1)
    def _finalize():
        s = o_ref[...]                                   # (n_tiles, tm) f32
        m = jnp.max(s, axis=1, keepdims=True)            # lane reduce
        m = jnp.max(m, axis=0, keepdims=True)            # sublane reduce (1,1)
        e = jnp.exp(s - m)                               # masked entries -> 0
        d = jnp.sum(e, axis=1, keepdims=True)
        d = jnp.sum(d, axis=0, keepdims=True)            # (1,1)
        o_ref[...] = e * pl.reciprocal(d, approx=False)  # exact simplex


def attn_forward(outputs, lin_w, lin_b, weight_vec, *, max_tile_rows=16 * 1024):
    """outputs: (S, 2H) float array; lin_w: (2H, 2H) torch Linear weight
    [out, in]; lin_b: (2H,); weight_vec: (1, 2H).
    Returns softmax attention weights of shape (1, 1, S), float32."""
    S, H2 = outputs.shape
    assert max_tile_rows % 128 == 0  # lane-dense rows / sublane alignment

    # u = v @ W  so that score_i = outputs[i] . u  (+ v.b, dropped: softmax is
    # shift-invariant, the bias constant cancels exactly in the output).
    v = weight_vec.reshape(1, H2).astype(jnp.float32)
    u = (v @ lin_w.astype(jnp.float32)).astype(outputs.dtype)     # (1, 2H)
    del lin_b  # cancels in the softmax

    # Tile the sequence axis.  Guidance: raise max_tile_rows to ~32K on v6e /
    # up to ~32-64K on v5e-v6e if S is huge; keep ~8-16K on v7x (64 MiB VMEM,
    # (tm,32) f32 pads to tm*512 B per pipeline buffer).
    tm = S if S <= max_tile_rows else max_tile_rows
    n_tiles = pl.cdiv(S, tm)

    kernel = functools.partial(_attn_scores_kernel, seq_len=S, tile_rows=tm)

    slab = pl.pallas_call(
        kernel,
        out_shape=jax.ShapeDtypeStruct((n_tiles, tm), jnp.float32),
        grid=(n_tiles,),
        in_specs=[
            pl.BlockSpec((tm, H2), lambda i: (i, 0)),    # streamed row tile
            pl.BlockSpec((1, H2), lambda i: (0, 0)),     # u (resident)
        ],
        out_specs=pl.BlockSpec((n_tiles, tm), lambda i: (0, 0)),   # resident
        compiler_params=pltpu.CompilerParams(
            dimension_semantics=("arbitrary",),   # revisited output block
            vmem_limit_bytes=48 * 1024 * 1024,    # fits v5e/v6e/v7x budgets
        ),
    )(outputs, u)

    # Row-major slab order == global sequence order; slice padding, then the
    # unsqueeze(0).unsqueeze(0) equivalent.
    return slab.reshape(-1)[:S].reshape(1, 1, S)


def attn_reference(outputs, w, b, weight_vec):
    energy = outputs @ w.T + b                       # (S, 2H) == Linear(outputs)
    scores = energy @ weight_vec.reshape(-1)         # (S,)
    scores = scores - jnp.max(scores)
    p = jnp.exp(scores)
    return (p / jnp.sum(p)).reshape(1, 1, -1)


if __name__ == "__main__":
    hidden_size = 16          # -> feature dim 2*H = 32
    H2 = 2 * hidden_size
    seq_len = 8

    key = jax.random.PRNGKey(0)
    k_x, k_w, k_b, k_v = jax.random.split(key, 4)

    # Synthetic parameters; shapes match the torch module __init__.
    outputs = jax.random.normal(k_x, (seq_len, H2), dtype=jnp.float32)
    lin_w = jax.random.normal(k_w, (H2, H2), dtype=jnp.float32) * 0.1   # Linear.weight (out,in)
    lin_b = jax.random.normal(k_b, (H2,), dtype=jnp.float32) * 0.1      # Linear.bias
    weight_vec = jax.random.normal(k_v, (1, H2), dtype=jnp.float32)     # self.weight_vec

    out = attn_forward(outputs, lin_w, lin_b, weight_vec)
    out = jax.block_until_ready(out)

    ref = attn_reference(outputs, lin_w, lin_b, weight_vec)
    assert out.shape == (1, 1, seq_len), out.shape
    # Tolerance covers fp32 reassociation from the algebraic collapse and the
    # dropped (shift-invariant) bias constant; softmax probs are O(0.1).
    assert jnp.allclose(out, ref, atol=1e-3, rtol=1e-3), (out, ref)

    print("KERNEL_OK")
</pallas_src>

<mosaic_0001>
module attributes {stable_mosaic.version = 11 : i64} {
  func.func @_attn_scores_kernel(%arg0: i32, %arg1: memref<8x32xf32, #tpu.memory_space<vmem>>, %arg2: memref<1x32xf32, #tpu.memory_space<vmem>>, %arg3: memref<1x8xf32, #tpu.memory_space<vmem>>) attributes {dimension_semantics = [#tpu.dimension_semantics<arbitrary>], iteration_bounds = array<i64: 1>, scalar_prefetch = 0 : i64, scratch_operands = 0 : i64, tpu.core_type = #tpu.core_type<tc>, window_params = [{transform_indices = @transform_0, window_bounds = array<i64: 8, 32>}, {pipeline_mode = #tpu.pipeline_mode<synchronous>, transform_indices = @transform_1, window_bounds = array<i64: 1, 32>}, {pipeline_mode = #tpu.pipeline_mode<synchronous>, transform_indices = @transform_2, window_bounds = array<i64: 1, 8>}]} {
    %c0 = arith.constant 0 : index
    %c0_0 = arith.constant 0 : index
    %0 = vector.load %arg1[%c0, %c0_0] : memref<8x32xf32, #tpu.memory_space<vmem>>, vector<8x32xf32>
    %c0_1 = arith.constant 0 : index
    %c0_2 = arith.constant 0 : index
    %1 = vector.load %arg2[%c0_1, %c0_2] : memref<1x32xf32, #tpu.memory_space<vmem>>, vector<1x32xf32>
    %cst = arith.constant dense<0.000000e+00> : vector<1x8xf32>
    %2 = tpu.matmul %1, %0, %cst {dimension_numbers = #tpu.dot_dimension_numbers<[1], [1], [0], [0], [0, 0, 1, 0], [], []>} : vector<1x32xf32>, vector<8x32xf32>, vector<1x8xf32> -> vector<1x8xf32>
    %3 = tpu.iota {dimensions = array<i32: 1>} : vector<1x8xi32>
    %c8_i32 = arith.constant 8 : i32
    %4 = arith.muli %arg0, %c8_i32 : i32
    %5 = vector.broadcast %4 : i32 to vector<1x8xi32>
    %6 = arith.addi %3, %5 : vector<1x8xi32>
    %c8_i32_3 = arith.constant 8 : i32
    %7 = vector.broadcast %c8_i32_3 : i32 to vector<1x8xi32>
    %8 = arith.cmpi slt, %6, %7 : vector<1x8xi32>
    %cst_4 = arith.constant 0xFF800000 : f32
    %9 = vector.broadcast %cst_4 : f32 to vector<1x8xf32>
    %10 = arith.select %8, %2, %9 : vector<1x8xi1>, vector<1x8xf32>
    %11 = arith.index_cast %arg0 : i32 to index
    %c0_5 = arith.constant 0 : index
    %12 = vector.load %arg3[%11, %c0_5] : memref<1x8xf32, #tpu.memory_space<vmem>>, vector<1x8xf32>
    tpu.vector_store %arg3[%11, %c0_5], %10 {strides = array<i32>} : memref<1x8xf32, #tpu.memory_space<vmem>>, vector<1x8xf32>,
    %c0_i32 = arith.constant 0 : i32
    %13 = arith.cmpi eq, %arg0, %c0_i32 : i32
    %14 = arith.extui %13 : i1 to i32
    %c0_i32_6 = arith.constant 0 : i32
    %15 = arith.cmpi ne, %14, %c0_i32_6 : i32
    scf.if %15 {
      %c0_7 = arith.constant 0 : index
      %c0_8 = arith.constant 0 : index
      %16 = vector.load %arg3[%c0_7, %c0_8] : memref<1x8xf32, #tpu.memory_space<vmem>>, vector<1x8xf32>
      %cst_9 = arith.constant dense<0xFF800000> : vector<1xf32>
      %17 = vector.multi_reduction <maximumf>, %16, %cst_9 [1] : vector<1x8xf32> to vector<1xf32>
      %18 = vector.shape_cast %17 : vector<1xf32> to vector<1x1xf32>
      %cst_10 = arith.constant dense<0xFF800000> : vector<1xf32>
      %19 = vector.multi_reduction <maximumf>, %18, %cst_10 [0] : vector<1x1xf32> to vector<1xf32>
      %20 = vector.shape_cast %19 : vector<1xf32> to vector<1x1xf32>
      %21 = vector.broadcast %20 : vector<1x1xf32> to vector<1x8xf32>
      %22 = arith.subf %16, %21 : vector<1x8xf32>
      %23 = math.exp %22 : vector<1x8xf32>
      %cst_11 = arith.constant dense<0.000000e+00> : vector<1xf32>
      %24 = vector.multi_reduction <add>, %23, %cst_11 [1] : vector<1x8xf32> to vector<1xf32>
      %25 = vector.shape_cast %24 : vector<1xf32> to vector<1x1xf32>
      %cst_12 = arith.constant dense<0.000000e+00> : vector<1xf32>
      %26 = vector.multi_reduction <add>, %25, %cst_12 [0] : vector<1x1xf32> to vector<1xf32>
      %27 = vector.shape_cast %26 : vector<1xf32> to vector<1x1xf32>
      %28 = tpu.reciprocal %27 : vector<1x1xf32> -> vector<1x1xf32>
      %29 = vector.broadcast %28 : vector<1x1xf32> to vector<1x8xf32>
      %30 = arith.mulf %23, %29 : vector<1x8xf32>
      %c0_13 = arith.constant 0 : index
      %c0_14 = arith.constant 0 : index
      %31 = vector.load %arg3[%c0_13, %c0_14] : memref<1x8xf32, #tpu.memory_space<vmem>>, vector<1x8xf32>
      tpu.vector_store %arg3[%c0_13, %c0_14], %30 {strides = array<i32>} : memref<1x8xf32, #tpu.memory_space<vmem>>, vector<1x8xf32>,
    } else {
    }
    return
  }
  func.func @transform_0(%arg0: i32) -> (i32, i32) {
    %c0_i32 = arith.constant 0 : i32
    %c0_i32_0 = arith.constant 0 : i32
    return %arg0, %c0_i32 : i32, i32
  }
  func.func @transform_1(%arg0: i32) -> (i32, i32) {
    %c0_i32 = arith.constant 0 : i32
    %c0_i32_0 = arith.constant 0 : i32
    %c0_i32_1 = arith.constant 0 : i32
    return %c0_i32, %c0_i32_0 : i32, i32
  }
  func.func @transform_2(%arg0: i32) -> (i32, i32) {
    %c0_i32 = arith.constant 0 : i32
    %c0_i32_0 = arith.constant 0 : i32
    %c0_i32_1 = arith.constant 0 : i32
    return %c0_i32, %c0_i32_0 : i32, i32
  }
}

</mosaic_0001>

<bundles_post_ra>
// kernel: tpu_custom_call.1
= control target key start
LH: loop header
LB: loop body
LE: loop exit
PB: predicated region body
PF: predicated region fallthrough
CT: control target
= control target key end

     0   :  { %7 = vsyncpa [#allocation3], 0  ;;  %s238_s0 = inlined_call_operand.hbm [shape: f32[8,32], index: 0, kind: input, shape index: {}]   ;;  %s239_s1 = inlined_call_operand.vmem [shape: f32[1,32], index: 1, kind: input, shape index: {}]   ;;  %s240_s2 = inlined_call_operand.hbm [shape: f32[1,8], index: 2, kind: output, shape index: {}]  }
   0x1   :  { %8 = vsyncpa [#allocation4], 0  ;;  %s206_s9 = smov [#allocation2]  }
   0x2   :  { %s15_s10 = sshll.u32 %s206_s9, 4  ;;  %s16_s10 = int_to_ptr.vmem [resolvable:$true] %s15_s10 }
   0x3   :  { %s170_s11 = scalar_lea.vmem %s16_s10, 128  ;;  %p175_p1 = scmp.lt.s32.totalorder %s16_s10, %s16_s10 }
   0x4   :  { %p171_p0 = scmp.ne.s32.totalorder %s16_s10, %s170_s11  ;;  %p176_p2 = scmp.lt.s32.totalorder %s170_s11, %s170_s11 }
   0x6   :  { %p177_p3 = por %p176_p2, %p175_p1 }
   0x8   :  { %p178_p4 = pnand %p177_p3, %p171_p0 }
   0xa   :  { %181 = shalt.err (!%p178_p4)
}
   0xb   :  { %18 = dma.hbm_to_vmem [thread:$0]  %s238_s0, 128, %s16_s10, [#allocation3]  }
   0xc   :  { %202 = dma.done.wait [#allocation3], 128  }
   0xd   :  { %203 = vsyncadd [#allocation3], 4294967168  ;;  %v207_v0 = vmov 0.0   ;;  %vm208_vm0 = vmmov 0   ;;  %vm26_vm1 = vcmask 261120   ;;  %v24_v1 = vld [vmem:[#allocation2] sm:$0xff]  ;;  %v103_v3 = vlaneseq }
   0xe   :  { %149 = vmatprep.subr.mxu0 %v207_v0  ;;  %151 = vmatprep.mubr.msk.f32.mxu0 %vm208_vm0, %v207_v0  ;;  %v25_v2 = vld [vmem:[%s239_s1] sm:$0x1]  ;;  %vm110_vm3 = vcmask 57344   ;;  %s209_s0 = smov [#allocation5]  }
   0xf   :  { %150 = vmatpush3.xpose.msk.msra.mxu0 %vm26_vm1, %v24_v1  ;;  %v104_v4 = vand.u32 127, %v103_v3  ;;  %s136_s1 = sshll.u32 %s209_s0, 4  ;;  %s137_s1 = int_to_ptr.vmem [resolvable:$true] %s136_s1 }
  0x10   :  { %s182_s16 = scalar_lea.vmem %s137_s1, 16  ;;  %s186_s17 = scalar_lea.vmem %s137_s1, 32 }
  0x11   :  { %vm108_vm2 = vcmp.lt.s32.totalorder %v104_v4, 8  ;;  %p183_p5 = scmp.ne.s32.totalorder %s137_s1, %s182_s16  ;;  %p187_p6 = scmp.lt.s32.totalorder %s137_s1, %s137_s1 }
  0x12   :  { %152 = vmatmul.mubr.msk.f32.vlgmr.msra.gmra.mxu0 %vm26_vm1, %v25_v2  ;;  %p188_p7 = scmp.lt.s32.totalorder %s186_s17, %s182_s16 }
  0x14   :  { %p189_p8 = por %p188_p7, %p187_p6 }
  0x16   :  { %p190_p9 = pnand %p189_p8, %p183_p5 }
  0xd2   :  { %v99_v5 = vpop.f32.mrf.mxu0 }
  0xd3   :  { %v109_v6 = vsel %vm108_vm2, %v99_v5, -inf }
  0xd4   :  { %111 = vst.msk [vmem:[#allocation5] sm:$0x1] %vm110_vm3, %v109_v6  ;;  %v153_v7 = vpop.f32.mrf.mxu0 }
  0xdb   :  { %v116_v8 = vld [vmem:[#allocation5] sm:$0x1] }
  0xdc   :  { %v117_v9 = vsel %vm110_vm3, %v116_v8, -inf }
  0xdd   :  { %118 = vmax.xlane.f32.xlu0 %v117_v9 }
 0x166   :  { %v119_v10 = vpop.xlane.xlu0 %118 }
 0x167   :  { %v120_v11 = vsub.f32 %v116_v8, %v119_v10 }
 0x169   :  { %v121_v12 = vmul.f32 1.442695, %v120_v11 }
 0x16b   :  { %158 = vpow2.f32 %v121_v12 }
 0x178   :  { %v159_v13 = vpop.eup %158 }
 0x179   :  { %v123_v14 = vsel %vm110_vm3, %v159_v13, 0.0 }
 0x17a   :  { %124 = vadd.xlane.f32.xlu0 %v123_v14 }
 0x203   :  { %v125_v15 = vpop.xlane.xlu0 %124 }
 0x204   :  { %160 = vrcp.f32 %v125_v15 }
 0x211   :  { %v161_v16 = vpop.eup %160 }
 0x212   :  { %v128_v17 = vmul.f32 %v161_v16, %v159_v13 }
 0x214   :  { %129 = vst.msk [vmem:[#allocation5] sm:$0x1] %vm110_vm3, %v128_v17 }
 0x215   :  { %193 = shalt.err (!%p190_p9)
}
 0x216   :  { %139 = dma.vmem_to_hbm [thread:$0]  %s137_s1, 16, %s240_s2, [#allocation4]  }
 0x217   :  { %204 = dma.done.wait [#allocation4], 16  }
 0x218   :  { %205 = vsyncadd [#allocation4], 4294967280 }
 0x219   :  { %143 = vsyncpa [#allocation3], 1 }
 0x21a   :  { %144 = vsyncpa [#allocation4], 1 }

</bundles_post_ra>
